<compile_context>
chip_gen: v7x
topology: tpu7x:2x2x1
jax: 0.10.0
libtpu: 0.0.40
codegen_flags: <defaults>
</compile_context>

<pallas_src>
from functools import partial

import jax
import jax.numpy as jnp
from jax.experimental import pallas as pl
from jax.experimental.pallas import tpu as pltpu

EPS = 1e-5          # nn.BatchNorm2d default eps
SUBLANES = 8        # f32 sublane granularity (Cout is padded to this, not to 128 lanes)


def _round_up(x, m):
    return (x + m - 1) // m * m


def _vmem_limit_bytes():
    """Generation-aware scoped-VMEM budget: ~3/4 of physical, capped at 100 MiB."""
    cap = 64 * 1024 * 1024
    try:
        cap = int(getattr(pltpu.get_tpu_info(), "vmem_capacity_bytes", cap))
    except Exception:
        pass
    return min(cap * 3 // 4, 100 * 1024 * 1024)


# ----------------------------- kernels ------------------------------------------------------

def _conv_slab(x_ref, w_ref, cols_ref, H, Wp, KH, KW):
    """3x3/s1/p1 conv of one CHW image as a single K = KH*KW*Cin MXU matmul.

    x_ref:    (1, Cin, R_in)  zero-padded image, rows flattened to (H+3)*Wp, compute dtype.
    w_ref:    (Cout_sub, KH*KW*Cin) weights, K ordered (dy, dx, ci), compute dtype.
    cols_ref: (KH*KW*Cin, H*Wp) VMEM scratch slab holding the shifted taps.
    Returns f32 (Cout_sub, H*Wp); columns with (col % Wp) >= W are junk (wrap positions).
    """
    HWp = H * Wp
    Cin = x_ref.shape[1]
    for t in range(KH * KW):
        dy, dx = divmod(t, KW)
        start = dy * Wp + dx
        # direct compute-dtype tap slice (no f32 round trip), staged into the K-slab
        cols_ref[t * Cin:(t + 1) * Cin, :] = x_ref[0, :, start:start + HWp]
    # one MXU matmul, accumulation in the MXU f32 accumulator
    return jnp.dot(w_ref[...], cols_ref[...], preferred_element_type=jnp.float32)


def _conv_stats_kernel(x_ref, w_ref, stats_ref, cols_ref, *, H, W, Wp, KH, KW):
    """Pass 1: per-image CENTERED BN partials (sum, M2) per channel."""
    acc = _conv_slab(x_ref, w_ref, cols_ref, H, Wp, KH, KW)          # (Cout_sub, H*Wp) f32
    col = jax.lax.broadcasted_iota(jnp.int32, acc.shape, 1) % Wp     # in-kernel column mask
    valid = col < W
    s = jnp.sum(jnp.where(valid, acc, 0.0), axis=1, keepdims=True)   # (Cout_sub, 1)
    m = s * (1.0 / (H * W))                                          # per-image channel mean
    centered = jnp.where(valid, acc - m, 0.0)
    m2 = jnp.sum(centered * centered, axis=1, keepdims=True)         # centered sum of squares
    lane = jax.lax.broadcasted_iota(jnp.int32, (acc.shape[0], 2), 1)
    stats_ref[0] = jnp.where(lane == 0, s, m2)                       # lane0=sum, lane1=M2


def _conv_bn_relu_kernel(x_ref, w_ref, scale_ref, shift_ref, o_ref, cols_ref,
                         *, H, Wp, KH, KW):
    """Pass 2: recompute conv, apply fused BN affine (f32) + ReLU, store in out dtype."""
    acc = _conv_slab(x_ref, w_ref, cols_ref, H, Wp, KH, KW)          # (Cout_sub, H*Wp) f32
    y = acc * scale_ref[...] + shift_ref[...]                        # (x-mean)*inv_std*g + b
    o_ref[0] = jnp.maximum(y, 0.0).astype(o_ref.dtype)               # ReLU


# ----------------------------- wrapper -------------------------------------------------------

@partial(jax.jit, static_argnames=("compute_dtype", "out_dtype"))
def conv_block_forward(x_nchw, w_oihw, gamma, beta, *,
                       compute_dtype=jnp.float32, out_dtype=None):
    N, Cin, H, W = x_nchw.shape
    Cout, Cin_w, KH, KW = w_oihw.shape
    assert Cin_w == Cin and KH == 3 and KW == 3, "kernel supports the module's 3x3/s1/p1 conv"
    out_dtype = compute_dtype if out_dtype is None else out_dtype
    pad = 1
    Wp = W + 2 * pad
    HWp = H * Wp
    K = KH * KW * Cin
    Cout_sub = _round_up(Cout, SUBLANES)          # sublane padding only (no 128-lane padding)

    # ---- glue (plain JAX): single pad + reshape, no transposes ------------------------------
    # spatial pad (1 top, 1 left/right) + 2 bottom rows (1 conv pad + 1 tap-overrun guard so
    # every flat tap slice — max offset 2*Wp + 2 — stays in bounds after flattening).
    xp = jnp.pad(x_nchw.astype(compute_dtype), ((0, 0), (0, 0), (pad, pad + 1), (pad, pad)))
    R_in = (H + 3) * Wp
    x_flat = xp.reshape(N, Cin, R_in)

    # weights: (Cout, Cin, KH, KW) -> (Cout_sub, KH*KW*Cin), K ordered (dy, dx, ci)
    w_mat = jnp.transpose(w_oihw, (0, 2, 3, 1)).reshape(Cout, K)
    w_mat = jnp.pad(w_mat, ((0, Cout_sub - Cout), (0, 0))).astype(compute_dtype)

    itemsize = jnp.dtype(compute_dtype).itemsize
    flops = 2 * N * HWp * K * Cout_sub
    bytes_x = N * Cin * R_in * itemsize
    bytes_w = Cout_sub * K * itemsize
    cparams = pltpu.CompilerParams(
        dimension_semantics=("parallel",),         # shard images across v7x TensorCores
        vmem_limit_bytes=_vmem_limit_bytes(),
    )
    cols_scratch = pltpu.VMEM((K, HWp), compute_dtype)   # per-image tap slab (tiny)

    # ---- pass 1: per-image centered BN partials ---------------------------------------------
    stats = pl.pallas_call(
        partial(_conv_stats_kernel, H=H, W=W, Wp=Wp, KH=KH, KW=KW),
        out_shape=jax.ShapeDtypeStruct((N, Cout_sub, 2), jnp.float32),
        grid=(N,),
        in_specs=[
            pl.BlockSpec((1, Cin, R_in), lambda n: (n, 0, 0)),
            pl.BlockSpec((Cout_sub, K), lambda n: (0, 0)),
        ],
        out_specs=pl.BlockSpec((1, Cout_sub, 2), lambda n: (n, 0, 0)),
        scratch_shapes=[cols_scratch],
        compiler_params=cparams,
        cost_estimate=pl.CostEstimate(
            flops=flops, transcendentals=0,
            bytes_accessed=bytes_x + bytes_w + N * Cout_sub * 2 * 4),
    )(x_flat, w_mat)

    # ---- tiny global combine (Chan's formula) + fused BN scale/shift (plain JAX) ------------
    n_img = jnp.float32(H * W)
    m_i = stats[:, :, 0] / n_img                            # per-image means   (N, Cout_sub)
    m2_i = stats[:, :, 1]                                   # per-image M2      (N, Cout_sub)
    mean = jnp.mean(m_i, axis=0)
    m2 = jnp.sum(m2_i, axis=0) + n_img * jnp.sum((m_i - mean[None, :]) ** 2, axis=0)
    var = m2 / (n_img * N)                                  # biased batch variance (train mode)
    inv_std = jax.lax.rsqrt(var + EPS)
    gamma_p = jnp.pad(gamma.astype(jnp.float32), (0, Cout_sub - Cout))
    beta_p = jnp.pad(beta.astype(jnp.float32), (0, Cout_sub - Cout))
    scale = (gamma_p * inv_std).reshape(Cout_sub, 1)
    shift = (beta_p - mean * gamma_p * inv_std).reshape(Cout_sub, 1)

    # ---- pass 2: conv (recomputed) + BN affine + ReLU ----------------------------------------
    y = pl.pallas_call(
        partial(_conv_bn_relu_kernel, H=H, Wp=Wp, KH=KH, KW=KW),
        out_shape=jax.ShapeDtypeStruct((N, Cout_sub, HWp), out_dtype),
        grid=(N,),
        in_specs=[
            pl.BlockSpec((1, Cin, R_in), lambda n: (n, 0, 0)),
            pl.BlockSpec((Cout_sub, K), lambda n: (0, 0)),
            pl.BlockSpec((Cout_sub, 1), lambda n: (0, 0)),
            pl.BlockSpec((Cout_sub, 1), lambda n: (0, 0)),
        ],
        out_specs=pl.BlockSpec((1, Cout_sub, HWp), lambda n: (n, 0, 0)),
        scratch_shapes=[cols_scratch],
        compiler_params=cparams,
        cost_estimate=pl.CostEstimate(
            flops=flops + 2 * N * HWp * Cout_sub, transcendentals=0,
            bytes_accessed=bytes_x + bytes_w + 2 * Cout_sub * 4
                           + N * Cout_sub * HWp * jnp.dtype(out_dtype).itemsize),
    )(x_flat, w_mat, scale, shift)

    # output is already NCHW (channels on sublanes): drop horizontal pad cols / channel pad
    return y.reshape(N, Cout_sub, H, Wp)[:, :Cout, :, :W]


# ----------------------------- pure-JAX reference --------------------------------------------

def reference_forward(x_nchw, w_oihw, gamma, beta):
    x_nhwc = jnp.transpose(x_nchw, (0, 2, 3, 1)).astype(jnp.float32)
    w_hwio = jnp.transpose(w_oihw, (2, 3, 1, 0)).astype(jnp.float32)
    y = jax.lax.conv_general_dilated(
        x_nhwc, w_hwio, window_strides=(1, 1), padding="SAME",
        dimension_numbers=("NHWC", "HWIO", "NHWC"))
    mean = jnp.mean(y, axis=(0, 1, 2), keepdims=True)
    var = jnp.mean((y - mean) ** 2, axis=(0, 1, 2), keepdims=True)
    y = (y - mean) * jax.lax.rsqrt(var + EPS)
    y = y * gamma.reshape(1, 1, 1, -1) + beta.reshape(1, 1, 1, -1)
    y = jnp.maximum(y, 0.0)
    return jnp.transpose(y, (0, 3, 1, 2))


if __name__ == "__main__":
    key = jax.random.PRNGKey(0)
    k_x, k_w = jax.random.split(key)

    N, Cin, H, W = 2, 4, 16, 16
    Cout, KH, KW = 8, 3, 3

    x = jax.random.normal(k_x, (N, Cin, H, W), dtype=jnp.float32)
    w = jax.random.normal(k_w, (Cout, Cin, KH, KW), dtype=jnp.float32) * 0.1
    # BatchNorm2d init: weight(gamma)=1, bias(beta)=0
    gamma = jnp.ones((Cout,), dtype=jnp.float32)
    beta = jnp.zeros((Cout,), dtype=jnp.float32)

    ref = jax.block_until_ready(reference_forward(x, w, gamma, beta))

    # f32 MXU path, f32 output (tight tolerance)
    out = jax.block_until_ready(conv_block_forward(x, w, gamma, beta,
                                                   compute_dtype=jnp.float32))
    assert out.shape == (N, Cout, H, W) and out.dtype == jnp.float32
    assert jnp.allclose(out, ref, atol=2e-3, rtol=2e-3)

    # bf16 MXU operands / f32 accumulation + f32 BN math, bf16 output (looser tolerance)
    out_bf16 = jax.block_until_ready(conv_block_forward(x, w, gamma, beta,
                                                        compute_dtype=jnp.bfloat16))
    assert out_bf16.shape == (N, Cout, H, W) and out_bf16.dtype == jnp.bfloat16
    assert jnp.allclose(out_bf16.astype(jnp.float32), ref, atol=6e-2, rtol=6e-2)

    print("KERNEL_OK")
</pallas_src>

<mosaic_0001>
module attributes {stable_mosaic.version = 11 : i64} {
  func.func @_conv_stats_kernel(%arg0: i32, %arg1: memref<1x4x342xf32, #tpu.memory_space<vmem>>, %arg2: memref<8x36xf32, #tpu.memory_space<vmem>>, %arg3: memref<1x8x2xf32, #tpu.memory_space<vmem>>, %arg4: memref<36x288xf32, #tpu.memory_space<vmem>>) attributes {dimension_semantics = [#tpu.dimension_semantics<parallel>], iteration_bounds = array<i64: 2>, scalar_prefetch = 0 : i64, scratch_operands = 1 : i64, tpu.core_type = #tpu.core_type<tc>, window_params = [{transform_indices = @transform_0, window_bounds = array<i64: 1, 4, 342>}, {pipeline_mode = #tpu.pipeline_mode<synchronous>, transform_indices = @transform_1, window_bounds = array<i64: 8, 36>}, {transform_indices = @transform_2, window_bounds = array<i64: 1, 8, 2>}]} {
    %c0 = arith.constant 0 : index
    %c0_0 = arith.constant 0 : index
    %c0_1 = arith.constant 0 : index
    %0 = vector.load %arg1[%c0, %c0_0, %c0_1] : memref<1x4x342xf32, #tpu.memory_space<vmem>>, vector<1x4x288xf32>
    %1 = vector.shape_cast %0 : vector<1x4x288xf32> to vector<4x288xf32>
    %c0_2 = arith.constant 0 : index
    %c0_3 = arith.constant 0 : index
    %2 = vector.load %arg4[%c0_2, %c0_3] : memref<36x288xf32, #tpu.memory_space<vmem>>, vector<4x288xf32>
    tpu.vector_store %arg4[%c0_2, %c0_3], %1 {strides = array<i32>} : memref<36x288xf32, #tpu.memory_space<vmem>>, vector<4x288xf32>,
    %c0_4 = arith.constant 0 : index
    %c0_5 = arith.constant 0 : index
    %c1 = arith.constant 1 : index
    %3 = vector.load %arg1[%c0_4, %c0_5, %c1] : memref<1x4x342xf32, #tpu.memory_space<vmem>>, vector<1x4x288xf32>
    %4 = vector.shape_cast %3 : vector<1x4x288xf32> to vector<4x288xf32>
    %c4 = arith.constant 4 : index
    %c0_6 = arith.constant 0 : index
    %5 = vector.load %arg4[%c4, %c0_6] : memref<36x288xf32, #tpu.memory_space<vmem>>, vector<4x288xf32>
    tpu.vector_store %arg4[%c4, %c0_6], %4 {strides = array<i32>} : memref<36x288xf32, #tpu.memory_space<vmem>>, vector<4x288xf32>,
    %c0_7 = arith.constant 0 : index
    %c0_8 = arith.constant 0 : index
    %c2 = arith.constant 2 : index
    %6 = vector.load %arg1[%c0_7, %c0_8, %c2] : memref<1x4x342xf32, #tpu.memory_space<vmem>>, vector<1x4x288xf32>
    %7 = vector.shape_cast %6 : vector<1x4x288xf32> to vector<4x288xf32>
    %c8 = arith.constant 8 : index
    %c0_9 = arith.constant 0 : index
    %8 = vector.load %arg4[%c8, %c0_9] : memref<36x288xf32, #tpu.memory_space<vmem>>, vector<4x288xf32>
    tpu.vector_store %arg4[%c8, %c0_9], %7 {strides = array<i32>} : memref<36x288xf32, #tpu.memory_space<vmem>>, vector<4x288xf32>,
    %c0_10 = arith.constant 0 : index
    %c0_11 = arith.constant 0 : index
    %c18 = arith.constant 18 : index
    %9 = vector.load %arg1[%c0_10, %c0_11, %c18] : memref<1x4x342xf32, #tpu.memory_space<vmem>>, vector<1x4x288xf32>
    %10 = vector.shape_cast %9 : vector<1x4x288xf32> to vector<4x288xf32>
    %c12 = arith.constant 12 : index
    %c0_12 = arith.constant 0 : index
    %11 = vector.load %arg4[%c12, %c0_12] : memref<36x288xf32, #tpu.memory_space<vmem>>, vector<4x288xf32>
    tpu.vector_store %arg4[%c12, %c0_12], %10 {strides = array<i32>} : memref<36x288xf32, #tpu.memory_space<vmem>>, vector<4x288xf32>,
    %c0_13 = arith.constant 0 : index
    %c0_14 = arith.constant 0 : index
    %c19 = arith.constant 19 : index
    %12 = vector.load %arg1[%c0_13, %c0_14, %c19] : memref<1x4x342xf32, #tpu.memory_space<vmem>>, vector<1x4x288xf32>
    %13 = vector.shape_cast %12 : vector<1x4x288xf32> to vector<4x288xf32>
    %c16 = arith.constant 16 : index
    %c0_15 = arith.constant 0 : index
    %14 = vector.load %arg4[%c16, %c0_15] : memref<36x288xf32, #tpu.memory_space<vmem>>, vector<4x288xf32>
    tpu.vector_store %arg4[%c16, %c0_15], %13 {strides = array<i32>} : memref<36x288xf32, #tpu.memory_space<vmem>>, vector<4x288xf32>,
    %c0_16 = arith.constant 0 : index
    %c0_17 = arith.constant 0 : index
    %c20 = arith.constant 20 : index
    %15 = vector.load %arg1[%c0_16, %c0_17, %c20] : memref<1x4x342xf32, #tpu.memory_space<vmem>>, vector<1x4x288xf32>
    %16 = vector.shape_cast %15 : vector<1x4x288xf32> to vector<4x288xf32>
    %c20_18 = arith.constant 20 : index
    %c0_19 = arith.constant 0 : index
    %17 = vector.load %arg4[%c20_18, %c0_19] : memref<36x288xf32, #tpu.memory_space<vmem>>, vector<4x288xf32>
    tpu.vector_store %arg4[%c20_18, %c0_19], %16 {strides = array<i32>} : memref<36x288xf32, #tpu.memory_space<vmem>>, vector<4x288xf32>,
    %c0_20 = arith.constant 0 : index
    %c0_21 = arith.constant 0 : index
    %c36 = arith.constant 36 : index
    %18 = vector.load %arg1[%c0_20, %c0_21, %c36] : memref<1x4x342xf32, #tpu.memory_space<vmem>>, vector<1x4x288xf32>
    %19 = vector.shape_cast %18 : vector<1x4x288xf32> to vector<4x288xf32>
    %c24 = arith.constant 24 : index
    %c0_22 = arith.constant 0 : index
    %20 = vector.load %arg4[%c24, %c0_22] : memref<36x288xf32, #tpu.memory_space<vmem>>, vector<4x288xf32>
    tpu.vector_store %arg4[%c24, %c0_22], %19 {strides = array<i32>} : memref<36x288xf32, #tpu.memory_space<vmem>>, vector<4x288xf32>,
    %c0_23 = arith.constant 0 : index
    %c0_24 = arith.constant 0 : index
    %c37 = arith.constant 37 : index
    %21 = vector.load %arg1[%c0_23, %c0_24, %c37] : memref<1x4x342xf32, #tpu.memory_space<vmem>>, vector<1x4x288xf32>
    %22 = vector.shape_cast %21 : vector<1x4x288xf32> to vector<4x288xf32>
    %c28 = arith.constant 28 : index
    %c0_25 = arith.constant 0 : index
    %23 = vector.load %arg4[%c28, %c0_25] : memref<36x288xf32, #tpu.memory_space<vmem>>, vector<4x288xf32>
    tpu.vector_store %arg4[%c28, %c0_25], %22 {strides = array<i32>} : memref<36x288xf32, #tpu.memory_space<vmem>>, vector<4x288xf32>,
    %c0_26 = arith.constant 0 : index
    %c0_27 = arith.constant 0 : index
    %c38 = arith.constant 38 : index
    %24 = vector.load %arg1[%c0_26, %c0_27, %c38] : memref<1x4x342xf32, #tpu.memory_space<vmem>>, vector<1x4x288xf32>
    %25 = vector.shape_cast %24 : vector<1x4x288xf32> to vector<4x288xf32>
    %c32 = arith.constant 32 : index
    %c0_28 = arith.constant 0 : index
    %26 = vector.load %arg4[%c32, %c0_28] : memref<36x288xf32, #tpu.memory_space<vmem>>, vector<4x288xf32>
    tpu.vector_store %arg4[%c32, %c0_28], %25 {strides = array<i32>} : memref<36x288xf32, #tpu.memory_space<vmem>>, vector<4x288xf32>,
    %c0_29 = arith.constant 0 : index
    %c0_30 = arith.constant 0 : index
    %27 = vector.load %arg2[%c0_29, %c0_30] : memref<8x36xf32, #tpu.memory_space<vmem>>, vector<8x36xf32>
    %c0_31 = arith.constant 0 : index
    %c0_32 = arith.constant 0 : index
    %28 = vector.load %arg4[%c0_31, %c0_32] : memref<36x288xf32, #tpu.memory_space<vmem>>, vector<36x288xf32>
    %cst = arith.constant dense<0.000000e+00> : vector<8x288xf32>
    %29 = tpu.matmul %27, %28, %cst {dimension_numbers = #tpu.dot_dimension_numbers<[1], [0], [0], [1], [0, 0, 1, 1], [], []>} : vector<8x36xf32>, vector<36x288xf32>, vector<8x288xf32> -> vector<8x288xf32>
    %30 = tpu.iota {dimensions = array<i32: 1>} : vector<8x288xi32>
    %c18_i32 = arith.constant 18 : i32
    %c0_i32 = arith.constant 0 : i32
    %31 = arith.cmpi eq, %c18_i32, %c0_i32 : i32
    %c1_i32 = arith.constant 1 : i32
    %32 = arith.select %31, %c1_i32, %c18_i32 : i32
    %33 = vector.broadcast %32 : i32 to vector<8x288xi32>
    %34 = arith.remsi %30, %33 : vector<8x288xi32>
    %c0_i32_33 = arith.constant 0 : i32
    %35 = vector.broadcast %c0_i32_33 : i32 to vector<8x288xi32>
    %36 = arith.cmpi ne, %34, %35 : vector<8x288xi32>
    %c0_i32_34 = arith.constant 0 : i32
    %37 = vector.broadcast %c0_i32_34 : i32 to vector<8x288xi32>
    %38 = arith.cmpi slt, %34, %37 : vector<8x288xi32>
    %c0_i32_35 = arith.constant 0 : i32
    %39 = arith.cmpi slt, %32, %c0_i32_35 : i32
    %40 = vector.broadcast %39 : i1 to vector<8x288xi1>
    %41 = vector.broadcast %40 : vector<8x288xi1> to vector<8x288xi1>
    %42 = arith.xori %38, %41 : vector<8x288xi1>
    %43 = arith.andi %42, %36 : vector<8x288xi1>
    %44 = vector.broadcast %32 : i32 to vector<8x288xi32>
    %45 = arith.addi %34, %44 : vector<8x288xi32>
    %46 = arith.select %43, %45, %34 : vector<8x288xi1>, vector<8x288xi32>
    %c16_i32 = arith.constant 16 : i32
    %47 = vector.broadcast %c16_i32 : i32 to vector<8x288xi32>
    %48 = arith.cmpi slt, %46, %47 : vector<8x288xi32>
    %cst_36 = arith.constant 0.000000e+00 : f32
    %49 = vector.broadcast %cst_36 : f32 to vector<8x288xf32>
    %50 = arith.select %48, %29, %49 : vector<8x288xi1>, vector<8x288xf32>
    %cst_37 = arith.constant dense<0.000000e+00> : vector<8xf32>
    %51 = vector.multi_reduction <add>, %50, %cst_37 [1] : vector<8x288xf32> to vector<8xf32>
    %52 = vector.shape_cast %51 : vector<8xf32> to vector<8x1xf32>
    %cst_38 = arith.constant 3.906250e-03 : f32
    %53 = vector.broadcast %cst_38 : f32 to vector<8x1xf32>
    %54 = arith.mulf %52, %53 : vector<8x1xf32>
    %55 = vector.broadcast %54 : vector<8x1xf32> to vector<8x288xf32>
    %56 = arith.subf %29, %55 : vector<8x288xf32>
    %cst_39 = arith.constant 0.000000e+00 : f32
    %57 = vector.broadcast %cst_39 : f32 to vector<8x288xf32>
    %58 = arith.select %48, %56, %57 : vector<8x288xi1>, vector<8x288xf32>
    %59 = arith.mulf %58, %58 : vector<8x288xf32>
    %cst_40 = arith.constant dense<0.000000e+00> : vector<8xf32>
    %60 = vector.multi_reduction <add>, %59, %cst_40 [1] : vector<8x288xf32> to vector<8xf32>
    %61 = vector.shape_cast %60 : vector<8xf32> to vector<8x1xf32>
    %62 = tpu.iota {dimensions = array<i32: 1>} : vector<8x2xi32>
    %c0_i32_41 = arith.constant 0 : i32
    %63 = vector.broadcast %c0_i32_41 : i32 to vector<8x2xi32>
    %64 = arith.cmpi eq, %62, %63 : vector<8x2xi32>
    %65 = vector.shape_cast %52 : vector<8x1xf32> to vector<8x1xf32>
    %66 = vector.broadcast %65 : vector<8x1xf32> to vector<8x2xf32>
    %67 = vector.shape_cast %61 : vector<8x1xf32> to vector<8x1xf32>
    %68 = vector.broadcast %67 : vector<8x1xf32> to vector<8x2xf32>
    %69 = arith.select %64, %66, %68 : vector<8x2xi1>, vector<8x2xf32>
    %c0_42 = arith.constant 0 : index
    %c0_43 = arith.constant 0 : index
    %c0_44 = arith.constant 0 : index
    %70 = vector.load %arg3[%c0_42, %c0_43, %c0_44] : memref<1x8x2xf32, #tpu.memory_space<vmem>>, vector<1x8x2xf32>
    %71 = vector.shape_cast %70 : vector<1x8x2xf32> to vector<8x2xf32>
    %72 = vector.shape_cast %69 : vector<8x2xf32> to vector<1x8x2xf32>
    tpu.vector_store %arg3[%c0_42, %c0_43, %c0_44], %72 {strides = array<i32>} : memref<1x8x2xf32, #tpu.memory_space<vmem>>, vector<1x8x2xf32>,
    return
  }
  func.func @transform_0(%arg0: i32) -> (i32, i32, i32) {
    %c0_i32 = arith.constant 0 : i32
    %c0_i32_0 = arith.constant 0 : i32
    %c0_i32_1 = arith.constant 0 : i32
    return %arg0, %c0_i32, %c0_i32_0 : i32, i32, i32
  }
  func.func @transform_1(%arg0: i32) -> (i32, i32) {
    %c0_i32 = arith.constant 0 : i32
    %c0_i32_0 = arith.constant 0 : i32
    %c0_i32_1 = arith.constant 0 : i32
    return %c0_i32, %c0_i32_0 : i32, i32
  }
  func.func @transform_2(%arg0: i32) -> (i32, i32, i32) {
    %c0_i32 = arith.constant 0 : i32
    %c0_i32_0 = arith.constant 0 : i32
    %c0_i32_1 = arith.constant 0 : i32
    return %arg0, %c0_i32, %c0_i32_0 : i32, i32, i32
  }
}

module attributes {stable_mosaic.version = 11 : i64} {
  func.func @_conv_bn_relu_kernel(%arg0: i32, %arg1: memref<1x4x342xf32, #tpu.memory_space<vmem>>, %arg2: memref<8x36xf32, #tpu.memory_space<vmem>>, %arg3: memref<8x1xf32, #tpu.memory_space<vmem>>, %arg4: memref<8x1xf32, #tpu.memory_space<vmem>>, %arg5: memref<1x8x288xf32, #tpu.memory_space<vmem>>, %arg6: memref<36x288xf32, #tpu.memory_space<vmem>>) attributes {dimension_semantics = [#tpu.dimension_semantics<parallel>], iteration_bounds = array<i64: 2>, scalar_prefetch = 0 : i64, scratch_operands = 1 : i64, tpu.core_type = #tpu.core_type<tc>, window_params = [{transform_indices = @transform_0, window_bounds = array<i64: 1, 4, 342>}, {pipeline_mode = #tpu.pipeline_mode<synchronous>, transform_indices = @transform_1, window_bounds = array<i64: 8, 36>}, {pipeline_mode = #tpu.pipeline_mode<synchronous>, transform_indices = @transform_2, window_bounds = array<i64: 8, 1>}, {pipeline_mode = #tpu.pipeline_mode<synchronous>, transform_indices = @transform_3, window_bounds = array<i64: 8, 1>}, {transform_indices = @transform_4, window_bounds = array<i64: 1, 8, 288>}]} {
    %c0 = arith.constant 0 : index
    %c0_0 = arith.constant 0 : index
    %c0_1 = arith.constant 0 : index
    %0 = vector.load %arg1[%c0, %c0_0, %c0_1] : memref<1x4x342xf32, #tpu.memory_space<vmem>>, vector<1x4x288xf32>
    %1 = vector.shape_cast %0 : vector<1x4x288xf32> to vector<4x288xf32>
    %c0_2 = arith.constant 0 : index
    %c0_3 = arith.constant 0 : index
    %2 = vector.load %arg6[%c0_2, %c0_3] : memref<36x288xf32, #tpu.memory_space<vmem>>, vector<4x288xf32>
    tpu.vector_store %arg6[%c0_2, %c0_3], %1 {strides = array<i32>} : memref<36x288xf32, #tpu.memory_space<vmem>>, vector<4x288xf32>,
    %c0_4 = arith.constant 0 : index
    %c0_5 = arith.constant 0 : index
    %c1 = arith.constant 1 : index
    %3 = vector.load %arg1[%c0_4, %c0_5, %c1] : memref<1x4x342xf32, #tpu.memory_space<vmem>>, vector<1x4x288xf32>
    %4 = vector.shape_cast %3 : vector<1x4x288xf32> to vector<4x288xf32>
    %c4 = arith.constant 4 : index
    %c0_6 = arith.constant 0 : index
    %5 = vector.load %arg6[%c4, %c0_6] : memref<36x288xf32, #tpu.memory_space<vmem>>, vector<4x288xf32>
    tpu.vector_store %arg6[%c4, %c0_6], %4 {strides = array<i32>} : memref<36x288xf32, #tpu.memory_space<vmem>>, vector<4x288xf32>,
    %c0_7 = arith.constant 0 : index
    %c0_8 = arith.constant 0 : index
    %c2 = arith.constant 2 : index
    %6 = vector.load %arg1[%c0_7, %c0_8, %c2] : memref<1x4x342xf32, #tpu.memory_space<vmem>>, vector<1x4x288xf32>
    %7 = vector.shape_cast %6 : vector<1x4x288xf32> to vector<4x288xf32>
    %c8 = arith.constant 8 : index
    %c0_9 = arith.constant 0 : index
    %8 = vector.load %arg6[%c8, %c0_9] : memref<36x288xf32, #tpu.memory_space<vmem>>, vector<4x288xf32>
    tpu.vector_store %arg6[%c8, %c0_9], %7 {strides = array<i32>} : memref<36x288xf32, #tpu.memory_space<vmem>>, vector<4x288xf32>,
    %c0_10 = arith.constant 0 : index
    %c0_11 = arith.constant 0 : index
    %c18 = arith.constant 18 : index
    %9 = vector.load %arg1[%c0_10, %c0_11, %c18] : memref<1x4x342xf32, #tpu.memory_space<vmem>>, vector<1x4x288xf32>
    %10 = vector.shape_cast %9 : vector<1x4x288xf32> to vector<4x288xf32>
    %c12 = arith.constant 12 : index
    %c0_12 = arith.constant 0 : index
    %11 = vector.load %arg6[%c12, %c0_12] : memref<36x288xf32, #tpu.memory_space<vmem>>, vector<4x288xf32>
    tpu.vector_store %arg6[%c12, %c0_12], %10 {strides = array<i32>} : memref<36x288xf32, #tpu.memory_space<vmem>>, vector<4x288xf32>,
    %c0_13 = arith.constant 0 : index
    %c0_14 = arith.constant 0 : index
    %c19 = arith.constant 19 : index
    %12 = vector.load %arg1[%c0_13, %c0_14, %c19] : memref<1x4x342xf32, #tpu.memory_space<vmem>>, vector<1x4x288xf32>
    %13 = vector.shape_cast %12 : vector<1x4x288xf32> to vector<4x288xf32>
    %c16 = arith.constant 16 : index
    %c0_15 = arith.constant 0 : index
    %14 = vector.load %arg6[%c16, %c0_15] : memref<36x288xf32, #tpu.memory_space<vmem>>, vector<4x288xf32>
    tpu.vector_store %arg6[%c16, %c0_15], %13 {strides = array<i32>} : memref<36x288xf32, #tpu.memory_space<vmem>>, vector<4x288xf32>,
    %c0_16 = arith.constant 0 : index
    %c0_17 = arith.constant 0 : index
    %c20 = arith.constant 20 : index
    %15 = vector.load %arg1[%c0_16, %c0_17, %c20] : memref<1x4x342xf32, #tpu.memory_space<vmem>>, vector<1x4x288xf32>
    %16 = vector.shape_cast %15 : vector<1x4x288xf32> to vector<4x288xf32>
    %c20_18 = arith.constant 20 : index
    %c0_19 = arith.constant 0 : index
    %17 = vector.load %arg6[%c20_18, %c0_19] : memref<36x288xf32, #tpu.memory_space<vmem>>, vector<4x288xf32>
    tpu.vector_store %arg6[%c20_18, %c0_19], %16 {strides = array<i32>} : memref<36x288xf32, #tpu.memory_space<vmem>>, vector<4x288xf32>,
    %c0_20 = arith.constant 0 : index
    %c0_21 = arith.constant 0 : index
    %c36 = arith.constant 36 : index
    %18 = vector.load %arg1[%c0_20, %c0_21, %c36] : memref<1x4x342xf32, #tpu.memory_space<vmem>>, vector<1x4x288xf32>
    %19 = vector.shape_cast %18 : vector<1x4x288xf32> to vector<4x288xf32>
    %c24 = arith.constant 24 : index
    %c0_22 = arith.constant 0 : index
    %20 = vector.load %arg6[%c24, %c0_22] : memref<36x288xf32, #tpu.memory_space<vmem>>, vector<4x288xf32>
    tpu.vector_store %arg6[%c24, %c0_22], %19 {strides = array<i32>} : memref<36x288xf32, #tpu.memory_space<vmem>>, vector<4x288xf32>,
    %c0_23 = arith.constant 0 : index
    %c0_24 = arith.constant 0 : index
    %c37 = arith.constant 37 : index
    %21 = vector.load %arg1[%c0_23, %c0_24, %c37] : memref<1x4x342xf32, #tpu.memory_space<vmem>>, vector<1x4x288xf32>
    %22 = vector.shape_cast %21 : vector<1x4x288xf32> to vector<4x288xf32>
    %c28 = arith.constant 28 : index
    %c0_25 = arith.constant 0 : index
    %23 = vector.load %arg6[%c28, %c0_25] : memref<36x288xf32, #tpu.memory_space<vmem>>, vector<4x288xf32>
    tpu.vector_store %arg6[%c28, %c0_25], %22 {strides = array<i32>} : memref<36x288xf32, #tpu.memory_space<vmem>>, vector<4x288xf32>,
    %c0_26 = arith.constant 0 : index
    %c0_27 = arith.constant 0 : index
    %c38 = arith.constant 38 : index
    %24 = vector.load %arg1[%c0_26, %c0_27, %c38] : memref<1x4x342xf32, #tpu.memory_space<vmem>>, vector<1x4x288xf32>
    %25 = vector.shape_cast %24 : vector<1x4x288xf32> to vector<4x288xf32>
    %c32 = arith.constant 32 : index
    %c0_28 = arith.constant 0 : index
    %26 = vector.load %arg6[%c32, %c0_28] : memref<36x288xf32, #tpu.memory_space<vmem>>, vector<4x288xf32>
    tpu.vector_store %arg6[%c32, %c0_28], %25 {strides = array<i32>} : memref<36x288xf32, #tpu.memory_space<vmem>>, vector<4x288xf32>,
    %c0_29 = arith.constant 0 : index
    %c0_30 = arith.constant 0 : index
    %27 = vector.load %arg2[%c0_29, %c0_30] : memref<8x36xf32, #tpu.memory_space<vmem>>, vector<8x36xf32>
    %c0_31 = arith.constant 0 : index
    %c0_32 = arith.constant 0 : index
    %28 = vector.load %arg6[%c0_31, %c0_32] : memref<36x288xf32, #tpu.memory_space<vmem>>, vector<36x288xf32>
    %cst = arith.constant dense<0.000000e+00> : vector<8x288xf32>
    %29 = tpu.matmul %27, %28, %cst {dimension_numbers = #tpu.dot_dimension_numbers<[1], [0], [0], [1], [0, 0, 1, 1], [], []>} : vector<8x36xf32>, vector<36x288xf32>, vector<8x288xf32> -> vector<8x288xf32>
    %c0_33 = arith.constant 0 : index
    %c0_34 = arith.constant 0 : index
    %30 = vector.load %arg3[%c0_33, %c0_34] : memref<8x1xf32, #tpu.memory_space<vmem>>, vector<8x1xf32>
    %31 = vector.broadcast %30 : vector<8x1xf32> to vector<8x288xf32>
    %32 = arith.mulf %29, %31 : vector<8x288xf32>
    %c0_35 = arith.constant 0 : index
    %c0_36 = arith.constant 0 : index
    %33 = vector.load %arg4[%c0_35, %c0_36] : memref<8x1xf32, #tpu.memory_space<vmem>>, vector<8x1xf32>
    %34 = vector.broadcast %33 : vector<8x1xf32> to vector<8x288xf32>
    %35 = arith.addf %32, %34 : vector<8x288xf32>
    %cst_37 = arith.constant 0.000000e+00 : f32
    %36 = vector.broadcast %cst_37 : f32 to vector<8x288xf32>
    %37 = arith.maximumf %35, %36 : vector<8x288xf32>
    %c0_38 = arith.constant 0 : index
    %c0_39 = arith.constant 0 : index
    %c0_40 = arith.constant 0 : index
    %38 = vector.load %arg5[%c0_38, %c0_39, %c0_40] : memref<1x8x288xf32, #tpu.memory_space<vmem>>, vector<1x8x288xf32>
    %39 = vector.shape_cast %38 : vector<1x8x288xf32> to vector<8x288xf32>
    %40 = vector.shape_cast %37 : vector<8x288xf32> to vector<1x8x288xf32>
    tpu.vector_store %arg5[%c0_38, %c0_39, %c0_40], %40 {strides = array<i32>} : memref<1x8x288xf32, #tpu.memory_space<vmem>>, vector<1x8x288xf32>,
    return
  }
  func.func @transform_0(%arg0: i32) -> (i32, i32, i32) {
    %c0_i32 = arith.constant 0 : i32
    %c0_i32_0 = arith.constant 0 : i32
    %c0_i32_1 = arith.constant 0 : i32
    return %arg0, %c0_i32, %c0_i32_0 : i32, i32, i32
  }
  func.func @transform_1(%arg0: i32) -> (i32, i32) {
    %c0_i32 = arith.constant 0 : i32
    %c0_i32_0 = arith.constant 0 : i32
    %c0_i32_1 = arith.constant 0 : i32
    return %c0_i32, %c0_i32_0 : i32, i32
  }
  func.func @transform_2(%arg0: i32) -> (i32, i32) {
    %c0_i32 = arith.constant 0 : i32
    %c0_i32_0 = arith.constant 0 : i32
    %c0_i32_1 = arith.constant 0 : i32
    return %c0_i32, %c0_i32_0 : i32, i32
  }
  func.func @transform_3(%arg0: i32) -> (i32, i32) {
    %c0_i32 = arith.constant 0 : i32
    %c0_i32_0 = arith.constant 0 : i32
    %c0_i32_1 = arith.constant 0 : i32
    return %c0_i32, %c0_i32_0 : i32, i32
  }
  func.func @transform_4(%arg0: i32) -> (i32, i32, i32) {
    %c0_i32 = arith.constant 0 : i32
    %c0_i32_0 = arith.constant 0 : i32
    %c0_i32_1 = arith.constant 0 : i32
    return %arg0, %c0_i32, %c0_i32_0 : i32, i32, i32
  }
}

</mosaic_0001>

<bundles_post_ra>
// kernel: conv_block_forward.2
= control target key start
LH: loop header
LB: loop body
LE: loop exit
PB: predicated region body
PF: predicated region fallthrough
CT: control target
= control target key end

     0   :  { %s736_s9 = smov 0   ;;  %s843_s0 = inlined_call_operand.vmem [shape: f32[2,4,342], index: 0, kind: input, shape index: {}]   ;;  %s844_s1 = inlined_call_operand.vmem [shape: f32[8,36], index: 1, kind: input, shape index: {}]   ;;  %s845_s2 = inlined_call_operand.vmem [shape: f32[2,8,2], index: 2, kind: output, shape index: {}]  }
   0x1 LB: > { %s623_s10 = sadd.s32 4294967295, %s708_s9   ;;  %p627_p0 = scmp.ge.s32.totalorder %s708_s9, 1  ;;  %s708_s9 = sphi %s736_s9, %s12_s9  }
   0x2   : > { %p112_p1 = scmp.lt.s32.totalorder %s708_s9, 3 }
   0x4   : > { %p113_p2 = pnand %p627_p0, %p112_p1 }
   0x5   : > { %p133_p3 = scmp.lt.s32.totalorder (!%p113_p2), %s623_s10, 1  ;;  %s710_s15 = smov (!%p113_p2), 126   ;;  %vm149_vm0 = vcmask (!%p113_p2), 257024   ;;  %v713_v6 = vmov (!%p113_p2), 0.0|0.0   ;;  %v718_v12 = vmov (!%p113_p2), 0.0   ;;  %vm720_vm1 = vmmov (!%p113_p2), 0  }
   0x6   : > { %116 = sbr.rel (%p113_p2) target bundleno = 704 (0x2c0), region = 28  ;;  %s711_s16 = smov (!%p113_p2), 127   ;;  %664 = vmatprep.subr.bf16.mxu1 (!%p113_p2), %v713_v6  ;;  %410 = vmatprep.mubr.f32.mxu0 (!%p113_p2), %v718_v12  ;;  %vm184_vm2 = vcmask (!%p113_p2), 1031168   ;;  %vm171_vm3 = vcmask (!%p113_p2), 261124   ;;  %vm205_vm4 = vcmask (!%p113_p2), 900096   ;;  %vm163_vm5 = vcmask (!%p113_p2), 1039360  }
   0x7   : > { %s712_s17 = smov (!%p113_p2), 110   ;;  %s714_s18 = smov (!%p113_p2), 109   ;;  %653 = vmatprep.mubr.msk.f32.mxu1 (!%p113_p2), %vm720_vm1, %v718_v12  ;;  %vm225_vm6 = vcmask (!%p113_p2), 891904   ;;  %vm246_vm7 = vcmask (!%p113_p2), 883712   ;;  %vm266_vm8 = vcmask (!%p113_p2), 752640   ;;  %vm287_vm9 = vcmask (!%p113_p2), 744448  }
   0x8   : > { %s715_s19 = smov (!%p113_p2), 108   ;;  %s716_s20 = smov (!%p113_p2), 92   ;;  %vm307_vm10 = vcmask (!%p113_p2), 736256   ;;  %vm336_vm11 = vcmask (!%p113_p2), 1043456   ;;  %vm332_vm12 = vcmask (!%p113_p2), 293888  }
   0x9   : > { %s717_s21 = smov (!%p113_p2), 91   ;;  %s719_s22 = smov (!%p113_p2), 90  }
   0xd   : > { %s853_s10 = smov (!%p133_p3, %s623_s10), 1 }
   0xe   : > { %s670_s11 = smul.u32 12, %s853_s10  ;;  %s629_s25 = sshll.u32 %s853_s10, 3 }
   0xf   : > { %s141_s28 = scalar_lea.vmem %s845_s2, %s629_s25 }
  0x10   : > { %s750_s14 = scalar_lea.vmem %s843_s0, %s670_s11 }
  0x11   : > { %v174_v0 = vld [vmem:[%s750_s14 + $0x8] sm:$0xf]  ;;  %v151_v1 = vld [vmem:[%s750_s14] sm:$0xff] }
  0x12   : > { %182 = vrot.lane.b32.xlu1 %v174_v0, %s710_s15  ;;  %159 = vrot.lane.b32.xlu0 %v151_v1, %s711_s16  ;;  %v177_v2 = vcombine.high %v151_v1, %v151_v1  ;;  %147 = vst [vmem:[#allocation2] sm:$0xf] %v151_v1  ;;  %v143_v3 = vld [vmem:[%s750_s14 + $0x8] sm:$0xf]  ;;  %v155_v7 = vcombine.low %v151_v1, %v151_v1 }
  0x13   : > { %v698_v4 = vld [vmem:[%s750_s14 + $0x8] ss:$0 sps:$4 sm:$0xff]   ;;  %150 = vst.msk [vmem:[#allocation2 + $0x10] sm:$0xf] %vm149_vm0, %v143_v3 }
  0x14   : > { %148 = vst [vmem:[#allocation2 + $0x8] sm:$0xf] %v177_v2  ;;  %v699_v5 = vld [vmem:[%s750_s14 + $0x8] ss:$0 sps:$4 sm:$0xff]  }
  0x15   : > { %v215_v8 = vld [vmem:[%s750_s14 + $0x8] sm:$0xf] }
  0x16   : > { %180 = vrot.lane.b32.xlu1 %v177_v2, %s710_s15  ;;  %201 = vrot.lane.b32.xlu0 %v151_v1, %s712_s17  ;;  %v700_v9 = vld [vmem:[%s750_s14 + $0x8] ss:$0 sps:$4 sm:$0xff]  }
  0x17   : > { %v256_v10 = vld [vmem:[%s750_s14 + $0x8] sm:$0xf] }
  0x18   : > { %v701_v11 = vld [vmem:[%s750_s14 + $0x8] ss:$0 sps:$4 sm:$0xff]  }
  0x19   : > { %v297_v13 = vld [vmem:[%s750_s14 + $0x8] sm:$0xf] }
  0x1a   : > { %203 = vrot.lane.b32.xlu1 %v698_v4, %s712_s17  ;;  %161 = vrot.lane.b32.xlu0 %v699_v5, %s711_s16 }
  0x1e   : > { %178 = vrot.lane.b32.xlu1 %v151_v1, %s710_s15  ;;  %157 = vrot.lane.b32.xlu0 %v155_v7, %s711_s16 }
  0x22   : > { %221 = vrot.lane.b32.xlu1 %v177_v2, %s714_s18  ;;  %199 = vrot.lane.b32.xlu0 %v155_v7, %s712_s17 }
  0x26   : > { %242 = vrot.lane.b32.xlu1 %v151_v1, %s715_s19  ;;  %223 = vrot.lane.b32.xlu0 %v215_v8, %s714_s18  ;;  %v316_v8 = vld [vmem:[%s844_s1] sm:$0xff] }
  0x2a   : > { %262 = vrot.lane.b32.xlu1 %v177_v2, %s716_s20  ;;  %244 = vrot.lane.b32.xlu0 %v700_v9, %s715_s19 }
  0x2e   : > { %283 = vrot.lane.b32.xlu1 %v151_v1, %s717_s21  ;;  %264 = vrot.lane.b32.xlu0 %v256_v10, %s716_s20 }
  0x32   : > { %219 = vrot.lane.b32.xlu1 %v151_v1, %s714_s18  ;;  %285 = vrot.lane.b32.xlu0 %v701_v11, %s717_s21 }
  0x36   : > { %260 = vrot.lane.b32.xlu1 %v151_v1, %s716_s20  ;;  %240 = vrot.lane.b32.xlu0 %v155_v7, %s715_s19 }
  0x3a   : > { %303 = vrot.lane.b32.xlu1 %v177_v2, %s719_s22  ;;  %281 = vrot.lane.b32.xlu0 %v155_v7, %s717_s21 }
  0x3e   : > { %301 = vrot.lane.b32.xlu1 %v151_v1, %s719_s22  ;;  %305 = vrot.lane.b32.xlu0 %v297_v13, %s719_s22 }
  0x84   : > { %v183_v14 = vpop.permute.xlu1 %182  ;;  %v160_v15 = vpop.permute.xlu0 %159 }
  0x85   : > { %192 = vst.msk [vmem:[#allocation2 + $0x28] sm:$0xf] %vm149_vm0, %v183_v14 }
  0x88   : > { %v181_v16 = vpop.permute.xlu1 %180  ;;  %v202_v17 = vpop.permute.xlu0 %201 }
  0x89   : > { %v186_v18 = vsel %vm184_vm2, %v181_v16, %v183_v14 }
  0x8a   : > { %191 = vst [vmem:[#allocation2 + $0x20] sm:$0xf] %v186_v18 }
  0x8c   : > { %v204_v19 = vpop.permute.xlu1 %203  ;;  %v162_v20 = vpop.permute.xlu0 %161 }
  0x8d   : > { %v207_v21 = vsel %vm205_vm4, %v202_v17, %v204_v19  ;;  %213 = vst.msk [vmem:[#allocation2 + $0x28] sm:$0xf0] %vm171_vm3, %v204_v19  ;;  %v165_v22 = vsel %vm163_vm5, %v160_v15, %v162_v20  ;;  %172 = vst.msk [vmem:[#allocation2 + $0x10] sm:$0xf0] %vm171_vm3, %v162_v20 }
  0x8e   : > { %212 = vst [vmem:[#allocation2 + $0x20] sm:$0xf0] %v207_v21  ;;  %170 = vst [vmem:[#allocation2 + $0x8] sm:$0xf0] %v165_v22 }
  0x90   : > { %v179_v23 = vpop.permute.xlu1 %178  ;;  %v158_v24 = vpop.permute.xlu0 %157 }
  0x91   : > { %v185_v25 = vsel %vm184_vm2, %v179_v23, %v181_v16  ;;  %v164_v26 = vsel %vm163_vm5, %v158_v24, %v160_v15 }
  0x92   : > { %190 = vst [vmem:[#allocation2 + $0x18] sm:$0xf] %v185_v25  ;;  %169 = vst [vmem:[#allocation2] sm:$0xf0] %v164_v26 }
  0x94   : > { %v222_v27 = vpop.permute.xlu1 %221  ;;  %v200_v28 = vpop.permute.xlu0 %199  ;;  %v319_v29 = vld [vmem:[#allocation2 + $0x10] sm:$0xff]  ;;  %v322_v30 = vld [vmem:[#allocation2 + $0x28] sm:$0xff] }
  0x95   : > { %v206_v31 = vsel %vm205_vm4, %v200_v28, %v202_v17  ;;  %v665_v32 = vpack.c.bf16 %v322_v30, %v319_v29  ;;  %v318_v33 = vld [vmem:[#allocation2 + $0x8] sm:$0xff]  ;;  %v321_v34 = vld [vmem:[#allocation2 + $0x20] sm:$0xff] }
  0x96   : > { %211 = vst [vmem:[#allocation2 + $0x18] sm:$0xf0] %v206_v31  ;;  %v656_v35 = vpack.c.bf16 %v321_v34, %v318_v33 }
  0x97   : > { %666 = vmatpush3.bf16.msra.mxu1 %v665_v32 }
  0x98   : > { %v243_v36 = vpop.permute.xlu1 %242  ;;  %v224_v37 = vpop.permute.xlu0 %223  ;;  %657 = vmatprep.subr.bf16.mxu0 %v656_v35  ;;  %667 = vmatprep.subr.bf16.mxu1 %v713_v6 }
  0x99   : > { %v227_v38 = vsel %vm225_vm6, %v222_v27, %v224_v37  ;;  %233 = vst.msk [vmem:[#allocation2 + $0x40] sm:$0xf] %vm149_vm0, %v224_v37  ;;  %v317_v42 = vld [vmem:[#allocation2] sm:$0xff] }
  0x9a   : > { %232 = vst [vmem:[#allocation2 + $0x38] sm:$0xf] %v227_v38 }
  0x9c   : > { %v263_v39 = vpop.permute.xlu1 %262  ;;  %v245_v40 = vpop.permute.xlu0 %244 }
  0x9d   : > { %v248_v41 = vsel %vm246_vm7, %v243_v36, %v245_v40  ;;  %254 = vst.msk [vmem:[#allocation2 + $0x40] sm:$0xf0] %vm171_vm3, %v245_v40  ;;  %v320_v43 = vld [vmem:[#allocation2 + $0x18] sm:$0xff] }
  0x9e   : > { %253 = vst [vmem:[#allocation2 + $0x38] sm:$0xf0] %v248_v41  ;;  %v658_v44 = vpack.c.bf16 %v320_v43, %v317_v42 }
  0xa0   : > { %v284_v45 = vpop.permute.xlu1 %283  ;;  %v265_v46 = vpop.permute.xlu0 %264  ;;  %659 = vmatpush1.bf16.msra.mxu0 %v658_v44 }
  0xa1   : > { %v268_v47 = vsel %vm266_vm8, %v263_v39, %v265_v46  ;;  %274 = vst.msk [vmem:[#allocation2 + $0x58] sm:$0xf] %vm149_vm0, %v265_v46 }
  0xa2   : > { %273 = vst [vmem:[#allocation2 + $0x50] sm:$0xf] %v268_v47 }
  0xa4   : > { %v220_v48 = vpop.permute.xlu1 %219  ;;  %v286_v49 = vpop.permute.xlu0 %285  ;;  %v325_v58 = vld [vmem:[#allocation2 + $0x40] sm:$0xff] }
  0xa5   : > { %v226_v50 = vsel %vm225_vm6, %v220_v48, %v222_v27  ;;  %v289_v51 = vsel %vm287_vm9, %v284_v45, %v286_v49  ;;  %295 = vst.msk [vmem:[#allocation2 + $0x58] sm:$0xf0] %vm171_vm3, %v286_v49  ;;  %v324_v62 = vld [vmem:[#allocation2 + $0x38] sm:$0xff] }
  0xa6   : > { %231 = vst [vmem:[#allocation2 + $0x30] sm:$0xf] %v226_v50  ;;  %294 = vst [vmem:[#allocation2 + $0x50] sm:$0xf0] %v289_v51 }
  0xa8   : > { %v261_v52 = vpop.permute.xlu1 %260  ;;  %v241_v53 = vpop.permute.xlu0 %240 }
  0xa9   : > { %v267_v54 = vsel %vm266_vm8, %v261_v52, %v263_v39  ;;  %v247_v55 = vsel %vm246_vm7, %v241_v53, %v243_v36 }
  0xaa   : > { %272 = vst [vmem:[#allocation2 + $0x48] sm:$0xf] %v267_v54  ;;  %252 = vst [vmem:[#allocation2 + $0x30] sm:$0xf0] %v247_v55 }
  0xac   : > { %v304_v56 = vpop.permute.xlu1 %303  ;;  %v282_v57 = vpop.permute.xlu0 %281  ;;  %v328_v59 = vld [vmem:[#allocation2 + $0x58] sm:$0xff] }
  0xad   : > { %v288_v60 = vsel %vm287_vm9, %v282_v57, %v284_v45  ;;  %v668_v61 = vpack.c.bf16 %v328_v59, %v325_v58  ;;  %v327_v63 = vld [vmem:[#allocation2 + $0x50] sm:$0xff]  ;;  %vm546_vm9 = vcmask 261120  }
  0xae   : > { %293 = vst [vmem:[#allocation2 + $0x48] sm:$0xf0] %v288_v60  ;;  %v660_v0 = vpack.c.bf16 %v327_v63, %v324_v62 }
  0xaf   : > { %669 = vmatpush3.bf16.msra.mxu1 %v668_v61 }
  0xb0   : > { %v302_v1 = vpop.permute.xlu1 %301  ;;  %v306_v2 = vpop.permute.xlu0 %305  ;;  %661 = vmatprep.subr.bf16.mxu0 %v660_v0  ;;  %651 = vmatprep.subr.mxu1 %v718_v12  ;;  %v487_v12 = vlaneseq }
  0xb1   : > { %v308_v3 = vsel %vm307_vm10, %v302_v1, %v304_v56  ;;  %v309_v4 = vsel %vm307_vm10, %v304_v56, %v306_v2  ;;  %315 = vst.msk [vmem:[#allocation2 + $0x70] sm:$0xf] %vm149_vm0, %v306_v2  ;;  %v323_v5 = vld [vmem:[#allocation2 + $0x30] sm:$0xff] }
  0xb2   : > { %313 = vst [vmem:[#allocation2 + $0x60] sm:$0xf] %v308_v3  ;;  %314 = vst [vmem:[#allocation2 + $0x68] sm:$0xf] %v309_v4  ;;  %v791_v13 = vand.u32 127, %v487_v12 }
  0xb4   : > { %v490_v14 = vadd.s32 256, %v791_v13  ;;  %v489_v15 = vadd.s32 128, %v791_v13  ;;  %v799_v18 = vmul.u32.u64.low 3817748708, %v791_v13  ;;  %v800_v19 = vmul.u32.u64.high 3817748708, %v791_v13, %v799_v18 }
  0xb5   : > { %v326_v6 = vld [vmem:[#allocation2 + $0x48] sm:$0xff]  ;;  %vm566_vm10 = vcmp.eq.s32.totalorder %v791_v13, 0 }
  0xb6   : > { %v662_v7 = vpack.c.bf16 %v326_v6, %v323_v5  ;;  %v795_v16 = vmul.u32.u64.low 3817748708, %v490_v14  ;;  %v796_v17 = vmul.u32.u64.high 3817748708, %v490_v14, %v795_v16  ;;  %v497_v23 = vshrl.u32 %v800_v19, 4 }
  0xb7   : > { %v802_v20 = vmul.u32.u64.low 3817748708, %v489_v15  ;;  %v803_v21 = vmul.u32.u64.high 3817748708, %v489_v15, %v802_v20 }
  0xb8   : > { %663 = vmatpush1.bf16.msra.mxu0 %v662_v7  ;;  %v331_v9 = vld [vmem:[#allocation2 + $0x70] sm:$0xf]  ;;  %v519_v22 = vshrl.u32 %v796_v17, 4  ;;  %v498_v26 = vmul.u32 18, %v497_v23 }
  0xb9   : > { %v330_v10 = vld [vmem:[#allocation2 + $0x68] sm:$0xf]  ;;  %652 = vmatpush3.msk.msra.mxu1 %vm336_vm11, %v331_v9  ;;  %v329_v11 = vld [vmem:[#allocation2 + $0x60] sm:$0xf]  ;;  %v508_v24 = vshrl.u32 %v803_v21, 4 }
  0xba   : > { %630 = vmatprep.subr.msk.mxu0 %vm336_vm11, %v330_v10  ;;  %654 = vmatmul.mubr.msk.f32.vlgmr.msra.gmra.mrb[0].mxu1 %vm332_vm12, %v316_v8  ;;  %v520_v25 = vmul.u32 18, %v519_v22  ;;  %v499_v29 = vsub.s32 %v791_v13, %v498_v26 }
  0xbb   : > { %v509_v27 = vmul.u32 18, %v508_v24 }
  0xbc   : > { %631 = vmatpush1.msk.msra.mxu0 %vm336_vm11, %v329_v11  ;;  %v521_v28 = vsub.s32 %v490_v14, %v520_v25  ;;  %vm524_vm15 = vcmp.ne.s32.totalorder %v499_v29, 0  ;;  %vm527_vm0 = vcmp.lt.s32.totalorder %v499_v29, 0  ;;  %v533_v32 = vadd.s32 18, %v499_v29 }
  0xbd   : > { %632 = vmatmul.mubr.msk.f32.vlgmr.msra.gmra.mrb[0].mxu0 %vm332_vm12, %v316_v8  ;;  %v510_v30 = vsub.s32 %v489_v15, %v509_v27  ;;  %vm530_vm4 = vmand %vm527_vm0, %vm524_vm15  ;;  %vm568_vm11 = vcmask 15360  }
  0xbe   : > { %vm526_vm13 = vcmp.ne.s32.totalorder %v521_v28, 0  ;;  %vm529_vm14 = vcmp.lt.s32.totalorder %v521_v28, 0  ;;  %v535_v31 = vadd.s32 18, %v521_v28  ;;  %v536_v35 = vsel %vm530_vm4, %v533_v32, %v499_v29 }
  0xbf   : > { %vm525_vm1 = vcmp.ne.s32.totalorder %v510_v30, 0  ;;  %vm528_vm2 = vcmp.lt.s32.totalorder %v510_v30, 0  ;;  %vm532_vm3 = vmand %vm529_vm14, %vm526_vm13  ;;  %v534_v33 = vadd.s32 18, %v510_v30  ;;  %vm813_vm7 = vcmp.lt.s32.totalorder %v536_v35, 16 }
  0xc0   : > { %vm531_vm5 = vmand %vm528_vm2, %vm525_vm1  ;;  %v538_v34 = vsel %vm532_vm3, %v535_v31, %v521_v28 }
  0xc1   : > { %v537_v36 = vsel %vm531_vm5, %v534_v33, %v510_v30  ;;  %vm809_vm6 = vcmp.lt.s32.totalorder %v538_v34, 16 }
  0xc2   : > { %vm817_vm8 = vcmp.lt.s32.totalorder %v537_v36, 16 }
 0x18d   : > { %v483_v38 = vpop.f32.mrb[0].mxu1 }
 0x18e   : > { %v655_v40 = vpop.f32.mrb[1].mxu1  ;;  %v544_v42 = vsel %vm809_vm6, %v483_v38, 0.0 }
 0x18f   : > { %v547_v47 = vsel %vm546_vm9, %v544_v42, 0.0 }
 0x190   : > { %v412_v43 = vpop.f32.mrb[0].mxu0 }
 0x191   : > { %v542_v44 = vsel %vm813_vm7, %v412_v43, 0.0  ;;  %v414_v45 = vpop.f32.mrb[1].mxu0 }
 0x192   : > { %v543_v46 = vsel %vm817_vm8, %v414_v45, 0.0 }
 0x193   : > { %v545_v48 = vadd.f32 %v543_v46, %v542_v44 }
 0x195   : > { %v548_v49 = vadd.f32 %v547_v47, %v545_v48 }
 0x197   : > { %549 = vadd.xlane.f32.xlu0 %v548_v49 }
 0x224   : > { %v550_v50 = vpop.xlane.xlu0 %549 }
 0x225   : > { %v551_v51 = vmul.f32 0.00390625, %v550_v50 }
 0x227   : > { %v552_v52 = vsub.f32 %v412_v43, %v551_v51  ;;  %v553_v53 = vsub.f32 %v414_v45, %v551_v51  ;;  %v554_v54 = vsub.f32 %v483_v38, %v551_v51 }
 0x229   : > { %v555_v55 = vsel %vm813_vm7, %v552_v52, 0.0  ;;  %v556_v56 = vsel %vm817_vm8, %v553_v53, 0.0  ;;  %v557_v57 = vsel %vm809_vm6, %v554_v54, 0.0 }
 0x22a   : > { %v558_v58 = vmul.f32 %v555_v55, %v555_v55  ;;  %v559_v59 = vmul.f32 %v556_v56, %v556_v56  ;;  %v560_v60 = vmul.f32 %v557_v57, %v557_v57 }
 0x22c   : > { %v561_v61 = vadd.f32 %v559_v59, %v558_v58  ;;  %v562_v62 = vsel %vm546_vm9, %v560_v60, 0.0 }
 0x22e   : > { %v563_v63 = vadd.f32 %v562_v62, %v561_v61 }
 0x230   : > { %564 = vadd.xlane.f32.xlu1 %v563_v63 }
 0x2bd   : > { %v565_v0 = vpop.xlane.xlu1 %564 }
 0x2be   : > { %v567_v1 = vsel %vm566_vm10, %v550_v50, %v565_v0 }
 0x2bf   : > { %569 = vst.msk [vmem:[%s141_s28] sm:$0xff] %vm568_vm11, %v567_v1 }
 0x2c0 PF: > { %s12_s9 = sadd.s32 1, %s708_s9  }
 0x2c1   : > { %p9_p4 = scmp.ge.s32.totalorder %s12_s9, 4  }
 0x2c3   :  { %11 = sbr.rel (!%p9_p4) target bundleno = 1 (0x1), region = 58 }

// kernel: conv_block_forward.3
= control target key start
LH: loop header
LB: loop body
LE: loop exit
PB: predicated region body
PF: predicated region fallthrough
CT: control target
= control target key end

     0   :  { %s745_s15 = smov 0   ;;  %s813_s0 = inlined_call_operand.vmem [shape: f32[2,4,342], index: 0, kind: input, shape index: {}]   ;;  %s814_s1 = inlined_call_operand.vmem [shape: f32[8,36], index: 1, kind: input, shape index: {}]   ;;  %s815_s2 = inlined_call_operand.vmem [shape: f32[8,1], index: 2, kind: input, shape index: {}]   ;;  %s816_s3 = inlined_call_operand.vmem [shape: f32[8,1], index: 3, kind: input, shape index: {}]   ;;  %s817_s4 = inlined_call_operand.vmem [shape: f32[2,8,288], index: 4, kind: output, shape index: {}]  }
   0x1 LB: > { %s623_s16 = sadd.s32 4294967295, %s706_s15   ;;  %p627_p0 = scmp.ge.s32.totalorder %s706_s15, 1  ;;  %s706_s15 = sphi %s745_s15, %s14_s15  }
   0x2   : > { %p162_p1 = scmp.lt.s32.totalorder %s706_s15, 3 }
   0x4   : > { %p163_p2 = pnand %p627_p0, %p162_p1 }
   0x5   : > { %p188_p3 = scmp.lt.s32.totalorder (!%p163_p2), %s623_s16, 1  ;;  %s708_s21 = smov (!%p163_p2), 126   ;;  %vm205_vm0 = vcmask (!%p163_p2), 257024   ;;  %v711_v6 = vmov (!%p163_p2), 0.0|0.0   ;;  %v716_v12 = vmov (!%p163_p2), 0.0   ;;  %vm718_vm1 = vmmov (!%p163_p2), 0  }
   0x6   : > { %166 = sbr.rel (%p163_p2) target bundleno = 409 (0x199), region = 36  ;;  %s709_s22 = smov (!%p163_p2), 127   ;;  %664 = vmatprep.subr.bf16.mxu1 (!%p163_p2), %v711_v6  ;;  %466 = vmatprep.mubr.f32.mxu0 (!%p163_p2), %v716_v12  ;;  %v719_v14 = vmov (!%p163_p2), 0   ;;  %v543_v15 = vld [vmem:[%s815_s2] sm:$0xff] (!%p163_p2)  ;;  %vm240_vm2 = vcmask (!%p163_p2), 1031168   ;;  %vm227_vm3 = vcmask (!%p163_p2), 261124  }
   0x7   : > { %s710_s23 = smov (!%p163_p2), 110   ;;  %s712_s24 = smov (!%p163_p2), 109   ;;  %653 = vmatprep.mubr.msk.f32.mxu1 (!%p163_p2), %vm718_vm1, %v716_v12  ;;  %692 = vset.pattern.permute.xlu0 (!%p163_p2), %v719_v14  ;;  %v552_v16 = vld [vmem:[%s816_s3] sm:$0xff] (!%p163_p2)  ;;  %vm261_vm4 = vcmask (!%p163_p2), 900096   ;;  %vm219_vm5 = vcmask (!%p163_p2), 1039360   ;;  %vm281_vm6 = vcmask (!%p163_p2), 891904  }
   0x8   : > { %s713_s25 = smov (!%p163_p2), 108   ;;  %s714_s26 = smov (!%p163_p2), 92   ;;  %693 = vset.pattern.permute.xlu1 (!%p163_p2), %v719_v14  ;;  %vm302_vm7 = vcmask (!%p163_p2), 883712   ;;  %vm322_vm8 = vcmask (!%p163_p2), 752640   ;;  %vm343_vm9 = vcmask (!%p163_p2), 744448   ;;  %vm363_vm10 = vcmask (!%p163_p2), 736256  }
   0x9   : > { %s715_s27 = smov (!%p163_p2), 91   ;;  %s717_s28 = smov (!%p163_p2), 90   ;;  %vm392_vm11 = vcmask (!%p163_p2), 1043456   ;;  %vm388_vm12 = vcmask (!%p163_p2), 293888   ;;  %vm566_vm13 = vcmask (!%p163_p2), 261120  }
   0xd   : > { %s819_s16 = smov (!%p188_p3, %s623_s16), 1 }
   0xe   : > { %s670_s17 = smul.u32 12, %s819_s16 }
   0xf   : > { %s671_s9 = smul.u32 24, %s819_s16 }
  0x10   : > { %s759_s20 = scalar_lea.vmem %s813_s0, %s670_s17 }
  0x11   : > { %v230_v0 = vld [vmem:[%s759_s20 + $0x8] sm:$0xf]  ;;  %v207_v1 = vld [vmem:[%s759_s20] sm:$0xff]  ;;  %s197_s12 = scalar_lea.vmem %s817_s4, %s671_s9 }
  0x12   : > { %238 = vrot.lane.b32.xlu1 %v230_v0, %s708_s21  ;;  %215 = vrot.lane.b32.xlu0 %v207_v1, %s709_s22  ;;  %v233_v2 = vcombine.high %v207_v1, %v207_v1  ;;  %203 = vst [vmem:[#allocation2] sm:$0xf] %v207_v1  ;;  %v199_v3 = vld [vmem:[%s759_s20 + $0x8] sm:$0xf]  ;;  %v211_v7 = vcombine.low %v207_v1, %v207_v1 }
  0x13   : > { %v696_v4 = vld [vmem:[%s759_s20 + $0x8] ss:$0 sps:$4 sm:$0xff]   ;;  %206 = vst.msk [vmem:[#allocation2 + $0x10] sm:$0xf] %vm205_vm0, %v199_v3 }
  0x14   : > { %204 = vst [vmem:[#allocation2 + $0x8] sm:$0xf] %v233_v2  ;;  %v697_v5 = vld [vmem:[%s759_s20 + $0x8] ss:$0 sps:$4 sm:$0xff]  }
  0x15   : > { %v271_v8 = vld [vmem:[%s759_s20 + $0x8] sm:$0xf] }
  0x16   : > { %236 = vrot.lane.b32.xlu1 %v233_v2, %s708_s21  ;;  %257 = vrot.lane.b32.xlu0 %v207_v1, %s710_s23  ;;  %v698_v9 = vld [vmem:[%s759_s20 + $0x8] ss:$0 sps:$4 sm:$0xff]  }
  0x17   : > { %v312_v10 = vld [vmem:[%s759_s20 + $0x8] sm:$0xf] }
  0x18   : > { %v699_v11 = vld [vmem:[%s759_s20 + $0x8] ss:$0 sps:$4 sm:$0xff]  }
  0x19   : > { %v353_v13 = vld [vmem:[%s759_s20 + $0x8] sm:$0xf] }
  0x1a   : > { %259 = vrot.lane.b32.xlu1 %v696_v4, %s710_s23  ;;  %217 = vrot.lane.b32.xlu0 %v697_v5, %s709_s22 }
  0x1e   : > { %234 = vrot.lane.b32.xlu1 %v207_v1, %s708_s21  ;;  %213 = vrot.lane.b32.xlu0 %v211_v7, %s709_s22 }
  0x22   : > { %277 = vrot.lane.b32.xlu1 %v233_v2, %s712_s24  ;;  %255 = vrot.lane.b32.xlu0 %v211_v7, %s710_s23 }
  0x26   : > { %298 = vrot.lane.b32.xlu1 %v207_v1, %s713_s25  ;;  %279 = vrot.lane.b32.xlu0 %v271_v8, %s712_s24 }
  0x2a   : > { %318 = vrot.lane.b32.xlu1 %v233_v2, %s714_s26  ;;  %300 = vrot.lane.b32.xlu0 %v698_v9, %s713_s25 }
  0x2e   : > { %339 = vrot.lane.b32.xlu1 %v207_v1, %s715_s27  ;;  %320 = vrot.lane.b32.xlu0 %v312_v10, %s714_s26 }
  0x32   : > { %275 = vrot.lane.b32.xlu1 %v207_v1, %s712_s24  ;;  %341 = vrot.lane.b32.xlu0 %v699_v11, %s715_s27  ;;  %v372_v11 = vld [vmem:[%s814_s1] sm:$0xff] }
  0x36   : > { %316 = vrot.lane.b32.xlu1 %v207_v1, %s714_s26  ;;  %296 = vrot.lane.b32.xlu0 %v211_v7, %s713_s25 }
  0x3a   : > { %359 = vrot.lane.b32.xlu1 %v233_v2, %s717_s28  ;;  %337 = vrot.lane.b32.xlu0 %v211_v7, %s715_s27 }
  0x3e   : > { %357 = vrot.lane.b32.xlu1 %v207_v1, %s717_s28  ;;  %361 = vrot.lane.b32.xlu0 %v353_v13, %s717_s28 }
  0x42   : > { %546 = vperm.xlu0 %692, %v543_v15   ;;  %555 = vperm.xlu1 %693, %v552_v16  }
  0x84   : > { %v239_v17 = vpop.permute.xlu1 %238  ;;  %v216_v18 = vpop.permute.xlu0 %215 }
  0x85   : > { %248 = vst.msk [vmem:[#allocation2 + $0x28] sm:$0xf] %vm205_vm0, %v239_v17 }
  0x88   : > { %v237_v19 = vpop.permute.xlu1 %236  ;;  %v258_v20 = vpop.permute.xlu0 %257 }
  0x89   : > { %v242_v21 = vsel %vm240_vm2, %v237_v19, %v239_v17 }
  0x8a   : > { %247 = vst [vmem:[#allocation2 + $0x20] sm:$0xf] %v242_v21 }
  0x8c   : > { %v260_v22 = vpop.permute.xlu1 %259  ;;  %v218_v23 = vpop.permute.xlu0 %217 }
  0x8d   : > { %v263_v24 = vsel %vm261_vm4, %v258_v20, %v260_v22  ;;  %269 = vst.msk [vmem:[#allocation2 + $0x28] sm:$0xf0] %vm227_vm3, %v260_v22  ;;  %v221_v25 = vsel %vm219_vm5, %v216_v18, %v218_v23  ;;  %228 = vst.msk [vmem:[#allocation2 + $0x10] sm:$0xf0] %vm227_vm3, %v218_v23 }
  0x8e   : > { %268 = vst [vmem:[#allocation2 + $0x20] sm:$0xf0] %v263_v24  ;;  %226 = vst [vmem:[#allocation2 + $0x8] sm:$0xf0] %v221_v25 }
  0x90   : > { %v235_v26 = vpop.permute.xlu1 %234  ;;  %v214_v27 = vpop.permute.xlu0 %213 }
  0x91   : > { %v241_v28 = vsel %vm240_vm2, %v235_v26, %v237_v19  ;;  %v220_v29 = vsel %vm219_vm5, %v214_v27, %v216_v18 }
  0x92   : > { %246 = vst [vmem:[#allocation2 + $0x18] sm:$0xf] %v241_v28  ;;  %225 = vst [vmem:[#allocation2] sm:$0xf0] %v220_v29 }
  0x94   : > { %v278_v30 = vpop.permute.xlu1 %277  ;;  %v256_v31 = vpop.permute.xlu0 %255  ;;  %v375_v32 = vld [vmem:[#allocation2 + $0x10] sm:$0xff]  ;;  %v378_v33 = vld [vmem:[#allocation2 + $0x28] sm:$0xff] }
  0x95   : > { %v262_v34 = vsel %vm261_vm4, %v256_v31, %v258_v20  ;;  %v665_v35 = vpack.c.bf16 %v378_v33, %v375_v32  ;;  %v374_v36 = vld [vmem:[#allocation2 + $0x8] sm:$0xff]  ;;  %v377_v37 = vld [vmem:[#allocation2 + $0x20] sm:$0xff] }
  0x96   : > { %267 = vst [vmem:[#allocation2 + $0x18] sm:$0xf0] %v262_v34  ;;  %v656_v38 = vpack.c.bf16 %v377_v37, %v374_v36 }
  0x97   : > { %666 = vmatpush3.bf16.msra.mxu1 %v665_v35 }
  0x98   : > { %v299_v39 = vpop.permute.xlu1 %298  ;;  %v280_v40 = vpop.permute.xlu0 %279  ;;  %657 = vmatprep.subr.bf16.mxu0 %v656_v38  ;;  %667 = vmatprep.subr.bf16.mxu1 %v711_v6 }
  0x99   : > { %v283_v41 = vsel %vm281_vm6, %v278_v30, %v280_v40  ;;  %289 = vst.msk [vmem:[#allocation2 + $0x40] sm:$0xf] %vm205_vm0, %v280_v40  ;;  %v373_v45 = vld [vmem:[#allocation2] sm:$0xff] }
  0x9a   : > { %288 = vst [vmem:[#allocation2 + $0x38] sm:$0xf] %v283_v41 }
  0x9c   : > { %v319_v42 = vpop.permute.xlu1 %318  ;;  %v301_v43 = vpop.permute.xlu0 %300 }
  0x9d   : > { %v304_v44 = vsel %vm302_vm7, %v299_v39, %v301_v43  ;;  %310 = vst.msk [vmem:[#allocation2 + $0x40] sm:$0xf0] %vm227_vm3, %v301_v43  ;;  %v376_v46 = vld [vmem:[#allocation2 + $0x18] sm:$0xff] }
  0x9e   : > { %309 = vst [vmem:[#allocation2 + $0x38] sm:$0xf0] %v304_v44  ;;  %v658_v47 = vpack.c.bf16 %v376_v46, %v373_v45 }
  0xa0   : > { %v340_v48 = vpop.permute.xlu1 %339  ;;  %v321_v49 = vpop.permute.xlu0 %320  ;;  %659 = vmatpush1.bf16.msra.mxu0 %v658_v47 }
  0xa1   : > { %v324_v50 = vsel %vm322_vm8, %v319_v42, %v321_v49  ;;  %330 = vst.msk [vmem:[#allocation2 + $0x58] sm:$0xf] %vm205_vm0, %v321_v49 }
  0xa2   : > { %329 = vst [vmem:[#allocation2 + $0x50] sm:$0xf] %v324_v50 }
  0xa4   : > { %v276_v51 = vpop.permute.xlu1 %275  ;;  %v342_v52 = vpop.permute.xlu0 %341  ;;  %v381_v61 = vld [vmem:[#allocation2 + $0x40] sm:$0xff] }
  0xa5   : > { %v282_v53 = vsel %vm281_vm6, %v276_v51, %v278_v30  ;;  %v345_v54 = vsel %vm343_vm9, %v340_v48, %v342_v52  ;;  %351 = vst.msk [vmem:[#allocation2 + $0x58] sm:$0xf0] %vm227_vm3, %v342_v52  ;;  %v380_v1 = vld [vmem:[#allocation2 + $0x38] sm:$0xff] }
  0xa6   : > { %287 = vst [vmem:[#allocation2 + $0x30] sm:$0xf] %v282_v53  ;;  %350 = vst [vmem:[#allocation2 + $0x50] sm:$0xf0] %v345_v54 }
  0xa8   : > { %v317_v55 = vpop.permute.xlu1 %316  ;;  %v297_v56 = vpop.permute.xlu0 %296 }
  0xa9   : > { %v323_v57 = vsel %vm322_vm8, %v317_v55, %v319_v42  ;;  %v303_v58 = vsel %vm302_vm7, %v297_v56, %v299_v39 }
  0xaa   : > { %328 = vst [vmem:[#allocation2 + $0x48] sm:$0xf] %v323_v57  ;;  %308 = vst [vmem:[#allocation2 + $0x30] sm:$0xf0] %v303_v58 }
  0xac   : > { %v360_v59 = vpop.permute.xlu1 %359  ;;  %v338_v60 = vpop.permute.xlu0 %337  ;;  %v384_v62 = vld [vmem:[#allocation2 + $0x58] sm:$0xff] }
  0xad   : > { %v344_v63 = vsel %vm343_vm9, %v338_v60, %v340_v48  ;;  %v668_v0 = vpack.c.bf16 %v384_v62, %v381_v61  ;;  %v383_v2 = vld [vmem:[#allocation2 + $0x50] sm:$0xff] }
  0xae   : > { %349 = vst [vmem:[#allocation2 + $0x48] sm:$0xf0] %v344_v63  ;;  %v660_v3 = vpack.c.bf16 %v383_v2, %v380_v1 }
  0xaf   : > { %669 = vmatpush3.bf16.msra.mxu1 %v668_v0 }
  0xb0   : > { %v358_v4 = vpop.permute.xlu1 %357  ;;  %v362_v5 = vpop.permute.xlu0 %361  ;;  %661 = vmatprep.subr.bf16.mxu0 %v660_v3  ;;  %651 = vmatprep.subr.mxu1 %v716_v12 }
  0xb1   : > { %v364_v6 = vsel %vm363_vm10, %v358_v4, %v360_v59  ;;  %v365_v7 = vsel %vm363_vm10, %v360_v59, %v362_v5  ;;  %371 = vst.msk [vmem:[#allocation2 + $0x70] sm:$0xf] %vm205_vm0, %v362_v5  ;;  %v379_v8 = vld [vmem:[#allocation2 + $0x30] sm:$0xff] }
  0xb2   : > { %369 = vst [vmem:[#allocation2 + $0x60] sm:$0xf] %v364_v6  ;;  %370 = vst [vmem:[#allocation2 + $0x68] sm:$0xf] %v365_v7 }
  0xb5   : > { %v382_v9 = vld [vmem:[#allocation2 + $0x48] sm:$0xff] }
  0xb6   : > { %v662_v10 = vpack.c.bf16 %v382_v9, %v379_v8 }
  0xb8   : > { %663 = vmatpush1.bf16.msra.mxu0 %v662_v10  ;;  %v387_v13 = vld [vmem:[#allocation2 + $0x70] sm:$0xf] }
  0xb9   : > { %v386_v14 = vld [vmem:[#allocation2 + $0x68] sm:$0xf]  ;;  %652 = vmatpush3.msk.msra.mxu1 %vm392_vm11, %v387_v13  ;;  %v385_v12 = vld [vmem:[#allocation2 + $0x60] sm:$0xf] }
  0xba   : > { %630 = vmatprep.subr.msk.mxu0 %vm392_vm11, %v386_v14  ;;  %654 = vmatmul.mubr.msk.f32.vlgmr.msra.gmra.mrb[0].mxu1 %vm388_vm12, %v372_v11 }
  0xbc   : > { %631 = vmatpush1.msk.msra.mxu0 %vm392_vm11, %v385_v12 }
  0xbd   : > { %632 = vmatmul.mubr.msk.f32.vlgmr.msra.gmra.mrb[0].mxu0 %vm388_vm12, %v372_v11 }
  0xc1   : > { %v547_v15 = vpop.permute.xlu0 %546  ;;  %v556_v17 = vpop.permute.xlu1 %555 }
 0x18d   : > { %v539_v16 = vpop.f32.mrb[0].mxu1 }
 0x18e   : > { %v551_v18 = vmul.f32 %v547_v15, %v539_v16  ;;  %v655_v19 = vpop.f32.mrb[1].mxu1 }
 0x190   : > { %v468_v20 = vpop.f32.mrb[0].mxu0  ;;  %v560_v21 = vadd.f32 %v556_v17, %v551_v18 }
 0x191   : > { %v549_v22 = vmul.f32 %v547_v15, %v468_v20  ;;  %v470_v23 = vpop.f32.mrb[1].mxu0 }
 0x192   : > { %v550_v24 = vmul.f32 %v547_v15, %v470_v23  ;;  %v563_v25 = vmax.f32 %v560_v21, 0.0 }
 0x193   : > { %v558_v26 = vadd.f32 %v556_v17, %v549_v22 }
 0x194   : > { %v559_v27 = vadd.f32 %v556_v17, %v550_v24  ;;  %567 = vst.msk [vmem:[%s197_s12 + $0x10] sm:$0xff] %vm566_vm13, %v563_v25 }
 0x195   : > { %v561_v28 = vmax.f32 %v558_v26, 0.0 }
 0x196   : > { %v562_v29 = vmax.f32 %v559_v27, 0.0 }
 0x197   : > { %564 = vst [vmem:[%s197_s12] sm:$0xff] %v561_v28 }
 0x198   : > { %565 = vst [vmem:[%s197_s12 + $0x8] sm:$0xff] %v562_v29 }
 0x199 PF: > { %s14_s15 = sadd.s32 1, %s706_s15  }
 0x19a   : > { %p11_p4 = scmp.ge.s32.totalorder %s14_s15, 4  }
 0x19c   :  { %13 = sbr.rel (!%p11_p4) target bundleno = 1 (0x1), region = 66 }

</bundles_post_ra>
